<compile_context>
chip_gen: v5e
topology: v5e:2x2
jax: 0.10.0
libtpu: 0.0.40
codegen_flags: <defaults>
</compile_context>

<pallas_src>
import functools
import math

import jax
import jax.numpy as jnp
from jax import lax
from jax.experimental import pallas as pl
from jax.experimental.pallas import tpu as pltpu


def _imha_kernel(q_ref, k_ref, v_ref,
                 wq_ref, bq_ref, wk_ref, bk_ref,
                 wv_ref, bv_ref, wo_ref, bo_ref,
                 out_ref, attn_ref,
                 *, num_heads, head_size):
    """One grid step = (one batch element, one Sq tile). K/V kept whole."""
    q = q_ref[0]                                   # [TQ, H]  bf16
    k = k_ref[0]                                   # [Sk, H]  bf16
    v = v_ref[0]                                   # [Sk, H]  bf16

    # Fused projections: weights pre-transposed in the wrapper, 1/sqrt(d)
    # already folded into wq/bq. One wide MXU matmul each, f32 accumulate.
    qh_all = jnp.dot(q, wq_ref[...],
                     preferred_element_type=jnp.float32) + bq_ref[...]   # [TQ, nh*d]
    kh_all = jnp.dot(k, wk_ref[...],
                     preferred_element_type=jnp.float32) + bk_ref[...]   # [Sk, nh*d]
    pv = (jnp.dot(v, wv_ref[...],
                  preferred_element_type=jnp.float32) + bv_ref[...]
          ).astype(jnp.bfloat16)                                         # [Sk, d]

    tq = q.shape[0]
    sk = k.shape[0]
    acc = jnp.zeros((tq, head_size), jnp.float32)
    attn_sum = jnp.zeros((tq, sk), jnp.float32)

    qh_all_b = qh_all.astype(jnp.bfloat16)
    kh_all_b = kh_all.astype(jnp.bfloat16)

    for h in range(num_heads):                     # static, small unrolled loop
        qh = qh_all_b[:, h * head_size:(h + 1) * head_size]              # [TQ, d]
        kh = kh_all_b[:, h * head_size:(h + 1) * head_size]              # [Sk, d]
        # scores = qh @ kh^T without an in-kernel transpose.
        scores = lax.dot_general(qh, kh, (((1,), (1,)), ((), ())),
                                 preferred_element_type=jnp.float32)     # [TQ, Sk]
        # Numerically stable softmax over the key axis (f32 on VPU/EUP).
        m = jnp.max(scores, axis=-1, keepdims=True)
        e = jnp.exp(scores - m)
        attn = e * pl.reciprocal(jnp.sum(e, axis=-1, keepdims=True), approx=True)
        attn_sum = attn_sum + attn
        acc = acc + jnp.dot(attn.astype(jnp.bfloat16), pv,
                            preferred_element_type=jnp.float32)          # [TQ, d]

    inv_h = 1.0 / num_heads
    head_mean = (acc * inv_h).astype(jnp.bfloat16)                       # [TQ, d]
    out = jnp.dot(head_mean, wo_ref[...],
                  preferred_element_type=jnp.float32) + bo_ref[...]      # [TQ, H]

    out_ref[0] = out.astype(out_ref.dtype)
    attn_ref[0] = (attn_sum * inv_h).astype(attn_ref.dtype)


def _pick_tq(sq):
    """Sq tile size: whole sequence when small, otherwise a 128/256 divisor."""
    if sq <= 256:
        return sq
    for cand in (256, 128, 64, 32, 16, 8):
        if sq % cand == 0:
            return cand
    return sq


def interpretable_mha(queries, keys, values, params, *, num_heads):
    """queries [B,Sq,H], keys/values [B,Sk,H] -> (out [B,Sq,H], attn [B,Sq,Sk])."""
    B, Sq, H = queries.shape
    Sk = keys.shape[1]
    d = H // num_heads
    inv_sqrt_d = 1.0 / math.sqrt(d)

    wq, bq, wk, bk, wv, bv, wo, bo = (
        params["wq"], params["bq"], params["wk"], params["bk"],
        params["wv"], params["bv"], params["wo"], params["bo"])

    # --- Host-side weight prep (one-time, free layout work) ----------------
    # Fuse per-head Q/K projections into [H, nh*d] pre-transposed matrices and
    # fold the 1/sqrt(d) attention scale into the Q weights and bias.
    wq_all = (jnp.transpose(wq, (2, 0, 1)).reshape(H, num_heads * d)
              * inv_sqrt_d).astype(jnp.bfloat16)                 # [H, nh*d]
    bq_all = (bq.reshape(1, num_heads * d) * inv_sqrt_d).astype(jnp.float32)
    wk_all = jnp.transpose(wk, (2, 0, 1)).reshape(H, num_heads * d
                                                  ).astype(jnp.bfloat16)
    bk_all = bk.reshape(1, num_heads * d).astype(jnp.float32)
    wv_t = wv.T.astype(jnp.bfloat16)                             # [H, d]
    bv_r = bv.reshape(1, d).astype(jnp.float32)
    wo_t = wo.T.astype(jnp.bfloat16)                             # [d, H]
    bo_r = bo.reshape(1, H).astype(jnp.float32)

    # bf16 activations for the MXU (halves DMA + VMEM); accumulation is f32.
    q_b = queries.astype(jnp.bfloat16)
    k_b = keys.astype(jnp.bfloat16)
    v_b = values.astype(jnp.bfloat16)

    TQ = _pick_tq(Sq)
    grid = (B, Sq // TQ)

    kernel = functools.partial(_imha_kernel, num_heads=num_heads, head_size=d)

    full = lambda shape: pl.BlockSpec(shape, lambda b, s: (0,) * len(shape))

    return pl.pallas_call(
        kernel,
        out_shape=(
            jax.ShapeDtypeStruct((B, Sq, H), jnp.float32),
            jax.ShapeDtypeStruct((B, Sq, Sk), jnp.float32),
        ),
        grid_spec=pltpu.PrefetchScalarGridSpec(
            num_scalar_prefetch=0,
            grid=grid,
            in_specs=[
                pl.BlockSpec((1, TQ, H), lambda b, s: (b, s, 0)),   # queries tile
                pl.BlockSpec((1, Sk, H), lambda b, s: (b, 0, 0)),   # keys (whole)
                pl.BlockSpec((1, Sk, H), lambda b, s: (b, 0, 0)),   # values (whole)
                full(wq_all.shape), full(bq_all.shape),
                full(wk_all.shape), full(bk_all.shape),
                full(wv_t.shape), full(bv_r.shape),
                full(wo_t.shape), full(bo_r.shape),
            ],
            out_specs=[
                pl.BlockSpec((1, TQ, H), lambda b, s: (b, s, 0)),
                pl.BlockSpec((1, TQ, Sk), lambda b, s: (b, s, 0)),
            ],
        ),
        compiler_params=pltpu.CompilerParams(
            dimension_semantics=("parallel", "parallel")),
    )(q_b, k_b, v_b, wq_all, bq_all, wk_all, bk_all, wv_t, bv_r, wo_t, bo_r)


def _reference(queries, keys, values, params, *, num_heads):
    """Pure-JAX f32 reference mirroring the PyTorch forward (eval mode)."""
    H = queries.shape[-1]
    d = H // num_heads
    pv = values @ params["wv"].T + params["bv"]                   # [B,Sk,d]
    outputs = jnp.zeros(queries.shape[:2] + (d,), jnp.float32)
    attn_all = []
    for h in range(num_heads):
        qh = queries @ params["wq"][h].T + params["bq"][h]
        kh = keys @ params["wk"][h].T + params["bk"][h]
        scores = (qh @ jnp.swapaxes(kh, -2, -1)) / math.sqrt(d)
        attn = jax.nn.softmax(scores, axis=-1)
        attn_all.append(attn)
        outputs = outputs + attn @ pv
    outputs = outputs / num_heads
    outputs = outputs @ params["wo"].T + params["bo"]
    return outputs, jnp.mean(jnp.stack(attn_all, axis=1), axis=1)


if __name__ == "__main__":
    B, Sq, Sk, H, NUM_HEADS = 2, 8, 8, 32, 4
    d = H // NUM_HEADS

    key = jax.random.PRNGKey(0)
    ks = jax.random.split(key, 16)

    # Deterministic parameter init (shapes from nn.Linear definitions).
    scale = 1.0 / math.sqrt(H)
    params = {
        "wq": jax.random.uniform(ks[0], (NUM_HEADS, d, H), jnp.float32, -scale, scale),
        "bq": jax.random.uniform(ks[1], (NUM_HEADS, d), jnp.float32, -scale, scale),
        "wk": jax.random.uniform(ks[2], (NUM_HEADS, d, H), jnp.float32, -scale, scale),
        "bk": jax.random.uniform(ks[3], (NUM_HEADS, d), jnp.float32, -scale, scale),
        "wv": jax.random.uniform(ks[4], (d, H), jnp.float32, -scale, scale),
        "bv": jax.random.uniform(ks[5], (1, d), jnp.float32, -scale, scale),
        "wo": jax.random.uniform(ks[6], (H, d), jnp.float32, -1 / math.sqrt(d), 1 / math.sqrt(d)),
        "bo": jax.random.uniform(ks[7], (1, H), jnp.float32, -1 / math.sqrt(d), 1 / math.sqrt(d)),
    }

    queries = jax.random.normal(ks[8], (B, Sq, H), jnp.float32)
    keys_in = jax.random.normal(ks[9], (B, Sk, H), jnp.float32)
    values = jax.random.normal(ks[10], (B, Sk, H), jnp.float32)

    out, attn = interpretable_mha(queries, keys_in, values, params, num_heads=NUM_HEADS)
    out = jax.block_until_ready(out)
    attn = jax.block_until_ready(attn)

    ref_out, ref_attn = _reference(queries, keys_in, values, params, num_heads=NUM_HEADS)
    assert out.shape == (B, Sq, H) and attn.shape == (B, Sq, Sk)
    # bf16 MXU operands + approx reciprocal => relaxed (but meaningful) tolerances.
    assert jnp.allclose(out, ref_out, atol=3e-2, rtol=3e-2), (
        float(jnp.max(jnp.abs(out - ref_out))))
    assert jnp.allclose(attn, ref_attn, atol=1e-2, rtol=1e-2), (
        float(jnp.max(jnp.abs(attn - ref_attn))))

    print("KERNEL_OK")
</pallas_src>

<mosaic_0001>
module attributes {stable_mosaic.version = 11 : i64} {
  func.func @_imha_kernel(%arg0: i32, %arg1: i32, %arg2: memref<1x8x32xbf16, #tpu.memory_space<vmem>>, %arg3: memref<1x8x32xbf16, #tpu.memory_space<vmem>>, %arg4: memref<1x8x32xbf16, #tpu.memory_space<vmem>>, %arg5: memref<32x32xbf16, #tpu.memory_space<vmem>>, %arg6: memref<1x32xf32, #tpu.memory_space<vmem>>, %arg7: memref<32x32xbf16, #tpu.memory_space<vmem>>, %arg8: memref<1x32xf32, #tpu.memory_space<vmem>>, %arg9: memref<32x8xbf16, #tpu.memory_space<vmem>>, %arg10: memref<1x8xf32, #tpu.memory_space<vmem>>, %arg11: memref<8x32xbf16, #tpu.memory_space<vmem>>, %arg12: memref<1x32xf32, #tpu.memory_space<vmem>>, %arg13: memref<1x8x32xf32, #tpu.memory_space<vmem>>, %arg14: memref<1x8x8xf32, #tpu.memory_space<vmem>>) attributes {dimension_semantics = [#tpu.dimension_semantics<parallel>, #tpu.dimension_semantics<parallel>], iteration_bounds = array<i64: 2, 1>, scalar_prefetch = 0 : i64, scratch_operands = 0 : i64, tpu.core_type = #tpu.core_type<tc>, window_params = [{transform_indices = @transform_0, window_bounds = array<i64: 1, 8, 32>}, {transform_indices = @transform_1, window_bounds = array<i64: 1, 8, 32>}, {transform_indices = @transform_2, window_bounds = array<i64: 1, 8, 32>}, {pipeline_mode = #tpu.pipeline_mode<synchronous>, transform_indices = @transform_3, window_bounds = array<i64: 32, 32>}, {pipeline_mode = #tpu.pipeline_mode<synchronous>, transform_indices = @transform_4, window_bounds = array<i64: 1, 32>}, {pipeline_mode = #tpu.pipeline_mode<synchronous>, transform_indices = @transform_5, window_bounds = array<i64: 32, 32>}, {pipeline_mode = #tpu.pipeline_mode<synchronous>, transform_indices = @transform_6, window_bounds = array<i64: 1, 32>}, {pipeline_mode = #tpu.pipeline_mode<synchronous>, transform_indices = @transform_7, window_bounds = array<i64: 32, 8>}, {pipeline_mode = #tpu.pipeline_mode<synchronous>, transform_indices = @transform_8, window_bounds = array<i64: 1, 8>}, {pipeline_mode = #tpu.pipeline_mode<synchronous>, transform_indices = @transform_9, window_bounds = array<i64: 8, 32>}, {pipeline_mode = #tpu.pipeline_mode<synchronous>, transform_indices = @transform_10, window_bounds = array<i64: 1, 32>}, {transform_indices = @transform_11, window_bounds = array<i64: 1, 8, 32>}, {transform_indices = @transform_12, window_bounds = array<i64: 1, 8, 8>}]} {
    %c0 = arith.constant 0 : index
    %c0_0 = arith.constant 0 : index
    %c0_1 = arith.constant 0 : index
    %0 = vector.load %arg2[%c0, %c0_0, %c0_1] : memref<1x8x32xbf16, #tpu.memory_space<vmem>>, vector<1x8x32xbf16>
    %1 = vector.shape_cast %0 : vector<1x8x32xbf16> to vector<8x32xbf16>
    %c0_2 = arith.constant 0 : index
    %c0_3 = arith.constant 0 : index
    %c0_4 = arith.constant 0 : index
    %2 = vector.load %arg3[%c0_2, %c0_3, %c0_4] : memref<1x8x32xbf16, #tpu.memory_space<vmem>>, vector<1x8x32xbf16>
    %3 = vector.shape_cast %2 : vector<1x8x32xbf16> to vector<8x32xbf16>
    %c0_5 = arith.constant 0 : index
    %c0_6 = arith.constant 0 : index
    %c0_7 = arith.constant 0 : index
    %4 = vector.load %arg4[%c0_5, %c0_6, %c0_7] : memref<1x8x32xbf16, #tpu.memory_space<vmem>>, vector<1x8x32xbf16>
    %5 = vector.shape_cast %4 : vector<1x8x32xbf16> to vector<8x32xbf16>
    %c0_8 = arith.constant 0 : index
    %c0_9 = arith.constant 0 : index
    %6 = vector.load %arg5[%c0_8, %c0_9] : memref<32x32xbf16, #tpu.memory_space<vmem>>, vector<32x32xbf16>
    %cst = arith.constant dense<0.000000e+00> : vector<8x32xf32>
    %7 = tpu.matmul %1, %6, %cst {dimension_numbers = #tpu.dot_dimension_numbers<[1], [0], [0], [1], [0, 0, 1, 1], [], []>} : vector<8x32xbf16>, vector<32x32xbf16>, vector<8x32xf32> -> vector<8x32xf32>
    %c0_10 = arith.constant 0 : index
    %c0_11 = arith.constant 0 : index
    %8 = vector.load %arg6[%c0_10, %c0_11] : memref<1x32xf32, #tpu.memory_space<vmem>>, vector<1x32xf32>
    %9 = vector.broadcast %8 : vector<1x32xf32> to vector<8x32xf32>
    %10 = arith.addf %7, %9 : vector<8x32xf32>
    %c0_12 = arith.constant 0 : index
    %c0_13 = arith.constant 0 : index
    %11 = vector.load %arg7[%c0_12, %c0_13] : memref<32x32xbf16, #tpu.memory_space<vmem>>, vector<32x32xbf16>
    %cst_14 = arith.constant dense<0.000000e+00> : vector<8x32xf32>
    %12 = tpu.matmul %3, %11, %cst_14 {dimension_numbers = #tpu.dot_dimension_numbers<[1], [0], [0], [1], [0, 0, 1, 1], [], []>} : vector<8x32xbf16>, vector<32x32xbf16>, vector<8x32xf32> -> vector<8x32xf32>
    %c0_15 = arith.constant 0 : index
    %c0_16 = arith.constant 0 : index
    %13 = vector.load %arg8[%c0_15, %c0_16] : memref<1x32xf32, #tpu.memory_space<vmem>>, vector<1x32xf32>
    %14 = vector.broadcast %13 : vector<1x32xf32> to vector<8x32xf32>
    %15 = arith.addf %12, %14 : vector<8x32xf32>
    %c0_17 = arith.constant 0 : index
    %c0_18 = arith.constant 0 : index
    %16 = vector.load %arg9[%c0_17, %c0_18] : memref<32x8xbf16, #tpu.memory_space<vmem>>, vector<32x8xbf16>
    %cst_19 = arith.constant dense<0.000000e+00> : vector<8x8xf32>
    %17 = tpu.matmul %5, %16, %cst_19 {dimension_numbers = #tpu.dot_dimension_numbers<[1], [0], [0], [1], [0, 0, 1, 1], [], []>} : vector<8x32xbf16>, vector<32x8xbf16>, vector<8x8xf32> -> vector<8x8xf32>
    %c0_20 = arith.constant 0 : index
    %c0_21 = arith.constant 0 : index
    %18 = vector.load %arg10[%c0_20, %c0_21] : memref<1x8xf32, #tpu.memory_space<vmem>>, vector<1x8xf32>
    %19 = vector.broadcast %18 : vector<1x8xf32> to vector<8x8xf32>
    %20 = arith.addf %17, %19 : vector<8x8xf32>
    %21 = arith.truncf %20 : vector<8x8xf32> to vector<8x8xbf16>
    %cst_22 = arith.constant 0.000000e+00 : f32
    %22 = vector.broadcast %cst_22 : f32 to vector<8x8xf32>
    %cst_23 = arith.constant 0.000000e+00 : f32
    %23 = vector.broadcast %cst_23 : f32 to vector<8x8xf32>
    %24 = arith.truncf %10 : vector<8x32xf32> to vector<8x32xbf16>
    %25 = arith.truncf %15 : vector<8x32xf32> to vector<8x32xbf16>
    %26 = vector.extract_strided_slice %24 {offsets = [0, 0], sizes = [8, 8], strides = [1, 1]} : vector<8x32xbf16> to vector<8x8xbf16>
    %27 = vector.extract_strided_slice %25 {offsets = [0, 0], sizes = [8, 8], strides = [1, 1]} : vector<8x32xbf16> to vector<8x8xbf16>
    %cst_24 = arith.constant dense<0.000000e+00> : vector<8x8xf32>
    %28 = tpu.matmul %26, %27, %cst_24 {dimension_numbers = #tpu.dot_dimension_numbers<[1], [1], [0], [0], [0, 0, 1, 0], [], []>} : vector<8x8xbf16>, vector<8x8xbf16>, vector<8x8xf32> -> vector<8x8xf32>
    %cst_25 = arith.constant dense<0xFF800000> : vector<8xf32>
    %29 = vector.multi_reduction <maximumf>, %28, %cst_25 [1] : vector<8x8xf32> to vector<8xf32>
    %30 = vector.shape_cast %29 : vector<8xf32> to vector<8x1xf32>
    %31 = vector.broadcast %30 : vector<8x1xf32> to vector<8x8xf32>
    %32 = arith.subf %28, %31 : vector<8x8xf32>
    %33 = math.exp %32 : vector<8x8xf32>
    %cst_26 = arith.constant dense<0.000000e+00> : vector<8xf32>
    %34 = vector.multi_reduction <add>, %33, %cst_26 [1] : vector<8x8xf32> to vector<8xf32>
    %35 = vector.shape_cast %34 : vector<8xf32> to vector<8x1xf32>
    %36 = tpu.reciprocal %35 {approx = true} : vector<8x1xf32> -> vector<8x1xf32>
    %37 = vector.broadcast %36 : vector<8x1xf32> to vector<8x8xf32>
    %38 = arith.mulf %33, %37 : vector<8x8xf32>
    %39 = arith.addf %23, %38 : vector<8x8xf32>
    %40 = arith.truncf %38 : vector<8x8xf32> to vector<8x8xbf16>
    %cst_27 = arith.constant dense<0.000000e+00> : vector<8x8xf32>
    %41 = tpu.matmul %40, %21, %cst_27 {dimension_numbers = #tpu.dot_dimension_numbers<[1], [0], [0], [1], [0, 0, 1, 1], [], []>} : vector<8x8xbf16>, vector<8x8xbf16>, vector<8x8xf32> -> vector<8x8xf32>
    %42 = arith.addf %22, %41 : vector<8x8xf32>
    %43 = vector.extract_strided_slice %24 {offsets = [0, 8], sizes = [8, 8], strides = [1, 1]} : vector<8x32xbf16> to vector<8x8xbf16>
    %44 = vector.extract_strided_slice %25 {offsets = [0, 8], sizes = [8, 8], strides = [1, 1]} : vector<8x32xbf16> to vector<8x8xbf16>
    %cst_28 = arith.constant dense<0.000000e+00> : vector<8x8xf32>
    %45 = tpu.matmul %43, %44, %cst_28 {dimension_numbers = #tpu.dot_dimension_numbers<[1], [1], [0], [0], [0, 0, 1, 0], [], []>} : vector<8x8xbf16>, vector<8x8xbf16>, vector<8x8xf32> -> vector<8x8xf32>
    %cst_29 = arith.constant dense<0xFF800000> : vector<8xf32>
    %46 = vector.multi_reduction <maximumf>, %45, %cst_29 [1] : vector<8x8xf32> to vector<8xf32>
    %47 = vector.shape_cast %46 : vector<8xf32> to vector<8x1xf32>
    %48 = vector.broadcast %47 : vector<8x1xf32> to vector<8x8xf32>
    %49 = arith.subf %45, %48 : vector<8x8xf32>
    %50 = math.exp %49 : vector<8x8xf32>
    %cst_30 = arith.constant dense<0.000000e+00> : vector<8xf32>
    %51 = vector.multi_reduction <add>, %50, %cst_30 [1] : vector<8x8xf32> to vector<8xf32>
    %52 = vector.shape_cast %51 : vector<8xf32> to vector<8x1xf32>
    %53 = tpu.reciprocal %52 {approx = true} : vector<8x1xf32> -> vector<8x1xf32>
    %54 = vector.broadcast %53 : vector<8x1xf32> to vector<8x8xf32>
    %55 = arith.mulf %50, %54 : vector<8x8xf32>
    %56 = arith.addf %39, %55 : vector<8x8xf32>
    %57 = arith.truncf %55 : vector<8x8xf32> to vector<8x8xbf16>
    %cst_31 = arith.constant dense<0.000000e+00> : vector<8x8xf32>
    %58 = tpu.matmul %57, %21, %cst_31 {dimension_numbers = #tpu.dot_dimension_numbers<[1], [0], [0], [1], [0, 0, 1, 1], [], []>} : vector<8x8xbf16>, vector<8x8xbf16>, vector<8x8xf32> -> vector<8x8xf32>
    %59 = arith.addf %42, %58 : vector<8x8xf32>
    %60 = vector.extract_strided_slice %24 {offsets = [0, 16], sizes = [8, 8], strides = [1, 1]} : vector<8x32xbf16> to vector<8x8xbf16>
    %61 = vector.extract_strided_slice %25 {offsets = [0, 16], sizes = [8, 8], strides = [1, 1]} : vector<8x32xbf16> to vector<8x8xbf16>
    %cst_32 = arith.constant dense<0.000000e+00> : vector<8x8xf32>
    %62 = tpu.matmul %60, %61, %cst_32 {dimension_numbers = #tpu.dot_dimension_numbers<[1], [1], [0], [0], [0, 0, 1, 0], [], []>} : vector<8x8xbf16>, vector<8x8xbf16>, vector<8x8xf32> -> vector<8x8xf32>
    %cst_33 = arith.constant dense<0xFF800000> : vector<8xf32>
    %63 = vector.multi_reduction <maximumf>, %62, %cst_33 [1] : vector<8x8xf32> to vector<8xf32>
    %64 = vector.shape_cast %63 : vector<8xf32> to vector<8x1xf32>
    %65 = vector.broadcast %64 : vector<8x1xf32> to vector<8x8xf32>
    %66 = arith.subf %62, %65 : vector<8x8xf32>
    %67 = math.exp %66 : vector<8x8xf32>
    %cst_34 = arith.constant dense<0.000000e+00> : vector<8xf32>
    %68 = vector.multi_reduction <add>, %67, %cst_34 [1] : vector<8x8xf32> to vector<8xf32>
    %69 = vector.shape_cast %68 : vector<8xf32> to vector<8x1xf32>
    %70 = tpu.reciprocal %69 {approx = true} : vector<8x1xf32> -> vector<8x1xf32>
    %71 = vector.broadcast %70 : vector<8x1xf32> to vector<8x8xf32>
    %72 = arith.mulf %67, %71 : vector<8x8xf32>
    %73 = arith.addf %56, %72 : vector<8x8xf32>
    %74 = arith.truncf %72 : vector<8x8xf32> to vector<8x8xbf16>
    %cst_35 = arith.constant dense<0.000000e+00> : vector<8x8xf32>
    %75 = tpu.matmul %74, %21, %cst_35 {dimension_numbers = #tpu.dot_dimension_numbers<[1], [0], [0], [1], [0, 0, 1, 1], [], []>} : vector<8x8xbf16>, vector<8x8xbf16>, vector<8x8xf32> -> vector<8x8xf32>
    %76 = arith.addf %59, %75 : vector<8x8xf32>
    %77 = vector.extract_strided_slice %24 {offsets = [0, 24], sizes = [8, 8], strides = [1, 1]} : vector<8x32xbf16> to vector<8x8xbf16>
    %78 = vector.extract_strided_slice %25 {offsets = [0, 24], sizes = [8, 8], strides = [1, 1]} : vector<8x32xbf16> to vector<8x8xbf16>
    %cst_36 = arith.constant dense<0.000000e+00> : vector<8x8xf32>
    %79 = tpu.matmul %77, %78, %cst_36 {dimension_numbers = #tpu.dot_dimension_numbers<[1], [1], [0], [0], [0, 0, 1, 0], [], []>} : vector<8x8xbf16>, vector<8x8xbf16>, vector<8x8xf32> -> vector<8x8xf32>
    %cst_37 = arith.constant dense<0xFF800000> : vector<8xf32>
    %80 = vector.multi_reduction <maximumf>, %79, %cst_37 [1] : vector<8x8xf32> to vector<8xf32>
    %81 = vector.shape_cast %80 : vector<8xf32> to vector<8x1xf32>
    %82 = vector.broadcast %81 : vector<8x1xf32> to vector<8x8xf32>
    %83 = arith.subf %79, %82 : vector<8x8xf32>
    %84 = math.exp %83 : vector<8x8xf32>
    %cst_38 = arith.constant dense<0.000000e+00> : vector<8xf32>
    %85 = vector.multi_reduction <add>, %84, %cst_38 [1] : vector<8x8xf32> to vector<8xf32>
    %86 = vector.shape_cast %85 : vector<8xf32> to vector<8x1xf32>
    %87 = tpu.reciprocal %86 {approx = true} : vector<8x1xf32> -> vector<8x1xf32>
    %88 = vector.broadcast %87 : vector<8x1xf32> to vector<8x8xf32>
    %89 = arith.mulf %84, %88 : vector<8x8xf32>
    %90 = arith.addf %73, %89 : vector<8x8xf32>
    %91 = arith.truncf %89 : vector<8x8xf32> to vector<8x8xbf16>
    %cst_39 = arith.constant dense<0.000000e+00> : vector<8x8xf32>
    %92 = tpu.matmul %91, %21, %cst_39 {dimension_numbers = #tpu.dot_dimension_numbers<[1], [0], [0], [1], [0, 0, 1, 1], [], []>} : vector<8x8xbf16>, vector<8x8xbf16>, vector<8x8xf32> -> vector<8x8xf32>
    %93 = arith.addf %76, %92 : vector<8x8xf32>
    %cst_40 = arith.constant 2.500000e-01 : f32
    %94 = vector.broadcast %cst_40 : f32 to vector<8x8xf32>
    %95 = arith.mulf %93, %94 : vector<8x8xf32>
    %96 = arith.truncf %95 : vector<8x8xf32> to vector<8x8xbf16>
    %c0_41 = arith.constant 0 : index
    %c0_42 = arith.constant 0 : index
    %97 = vector.load %arg11[%c0_41, %c0_42] : memref<8x32xbf16, #tpu.memory_space<vmem>>, vector<8x32xbf16>
    %cst_43 = arith.constant dense<0.000000e+00> : vector<8x32xf32>
    %98 = tpu.matmul %96, %97, %cst_43 {dimension_numbers = #tpu.dot_dimension_numbers<[1], [0], [0], [1], [0, 0, 1, 1], [], []>} : vector<8x8xbf16>, vector<8x32xbf16>, vector<8x32xf32> -> vector<8x32xf32>
    %c0_44 = arith.constant 0 : index
    %c0_45 = arith.constant 0 : index
    %99 = vector.load %arg12[%c0_44, %c0_45] : memref<1x32xf32, #tpu.memory_space<vmem>>, vector<1x32xf32>
    %100 = vector.broadcast %99 : vector<1x32xf32> to vector<8x32xf32>
    %101 = arith.addf %98, %100 : vector<8x32xf32>
    %c0_46 = arith.constant 0 : index
    %c0_47 = arith.constant 0 : index
    %c0_48 = arith.constant 0 : index
    %102 = vector.load %arg13[%c0_46, %c0_47, %c0_48] : memref<1x8x32xf32, #tpu.memory_space<vmem>>, vector<1x8x32xf32>
    %103 = vector.shape_cast %102 : vector<1x8x32xf32> to vector<8x32xf32>
    %104 = vector.shape_cast %101 : vector<8x32xf32> to vector<1x8x32xf32>
    tpu.vector_store %arg13[%c0_46, %c0_47, %c0_48], %104 {strides = array<i32>} : memref<1x8x32xf32, #tpu.memory_space<vmem>>, vector<1x8x32xf32>,
    %cst_49 = arith.constant 2.500000e-01 : f32
    %105 = vector.broadcast %cst_49 : f32 to vector<8x8xf32>
    %106 = arith.mulf %90, %105 : vector<8x8xf32>
    %c0_50 = arith.constant 0 : index
    %c0_51 = arith.constant 0 : index
    %c0_52 = arith.constant 0 : index
    %107 = vector.load %arg14[%c0_50, %c0_51, %c0_52] : memref<1x8x8xf32, #tpu.memory_space<vmem>>, vector<1x8x8xf32>
    %108 = vector.shape_cast %107 : vector<1x8x8xf32> to vector<8x8xf32>
    %109 = vector.shape_cast %106 : vector<8x8xf32> to vector<1x8x8xf32>
    tpu.vector_store %arg14[%c0_50, %c0_51, %c0_52], %109 {strides = array<i32>} : memref<1x8x8xf32, #tpu.memory_space<vmem>>, vector<1x8x8xf32>,
    return
  }
  func.func @transform_0(%arg0: i32, %arg1: i32) -> (i32, i32, i32) {
    %c0_i32 = arith.constant 0 : i32
    %c0_i32_0 = arith.constant 0 : i32
    return %arg0, %arg1, %c0_i32 : i32, i32, i32
  }
  func.func @transform_1(%arg0: i32, %arg1: i32) -> (i32, i32, i32) {
    %c0_i32 = arith.constant 0 : i32
    %c0_i32_0 = arith.constant 0 : i32
    %c0_i32_1 = arith.constant 0 : i32
    return %arg0, %c0_i32, %c0_i32_0 : i32, i32, i32
  }
  func.func @transform_2(%arg0: i32, %arg1: i32) -> (i32, i32, i32) {
    %c0_i32 = arith.constant 0 : i32
    %c0_i32_0 = arith.constant 0 : i32
    %c0_i32_1 = arith.constant 0 : i32
    return %arg0, %c0_i32, %c0_i32_0 : i32, i32, i32
  }
  func.func @transform_3(%arg0: i32, %arg1: i32) -> (i32, i32) {
    %c0_i32 = arith.constant 0 : i32
    %c0_i32_0 = arith.constant 0 : i32
    %c0_i32_1 = arith.constant 0 : i32
    return %c0_i32, %c0_i32_0 : i32, i32
  }
  func.func @transform_4(%arg0: i32, %arg1: i32) -> (i32, i32) {
    %c0_i32 = arith.constant 0 : i32
    %c0_i32_0 = arith.constant 0 : i32
    %c0_i32_1 = arith.constant 0 : i32
    return %c0_i32, %c0_i32_0 : i32, i32
  }
  func.func @transform_5(%arg0: i32, %arg1: i32) -> (i32, i32) {
    %c0_i32 = arith.constant 0 : i32
    %c0_i32_0 = arith.constant 0 : i32
    %c0_i32_1 = arith.constant 0 : i32
    return %c0_i32, %c0_i32_0 : i32, i32
  }
  func.func @transform_6(%arg0: i32, %arg1: i32) -> (i32, i32) {
    %c0_i32 = arith.constant 0 : i32
    %c0_i32_0 = arith.constant 0 : i32
    %c0_i32_1 = arith.constant 0 : i32
    return %c0_i32, %c0_i32_0 : i32, i32
  }
  func.func @transform_7(%arg0: i32, %arg1: i32) -> (i32, i32) {
    %c0_i32 = arith.constant 0 : i32
    %c0_i32_0 = arith.constant 0 : i32
    %c0_i32_1 = arith.constant 0 : i32
    return %c0_i32, %c0_i32_0 : i32, i32
  }
  func.func @transform_8(%arg0: i32, %arg1: i32) -> (i32, i32) {
    %c0_i32 = arith.constant 0 : i32
    %c0_i32_0 = arith.constant 0 : i32
    %c0_i32_1 = arith.constant 0 : i32
    return %c0_i32, %c0_i32_0 : i32, i32
  }
  func.func @transform_9(%arg0: i32, %arg1: i32) -> (i32, i32) {
    %c0_i32 = arith.constant 0 : i32
    %c0_i32_0 = arith.constant 0 : i32
    %c0_i32_1 = arith.constant 0 : i32
    return %c0_i32, %c0_i32_0 : i32, i32
  }
  func.func @transform_10(%arg0: i32, %arg1: i32) -> (i32, i32) {
    %c0_i32 = arith.constant 0 : i32
    %c0_i32_0 = arith.constant 0 : i32
    %c0_i32_1 = arith.constant 0 : i32
    return %c0_i32, %c0_i32_0 : i32, i32
  }
  func.func @transform_11(%arg0: i32, %arg1: i32) -> (i32, i32, i32) {
    %c0_i32 = arith.constant 0 : i32
    %c0_i32_0 = arith.constant 0 : i32
    return %arg0, %arg1, %c0_i32 : i32, i32, i32
  }
  func.func @transform_12(%arg0: i32, %arg1: i32) -> (i32, i32, i32) {
    %c0_i32 = arith.constant 0 : i32
    %c0_i32_0 = arith.constant 0 : i32
    return %arg0, %arg1, %c0_i32 : i32, i32, i32
  }
}

</mosaic_0001>

<bundles_post_ra>
// kernel: tpu_custom_call.1
= control target key start
LH: loop header
LB: loop body
LE: loop exit
PB: predicated region body
PF: predicated region fallthrough
CT: control target
= control target key end

     0   :  { %s1878_s0 = inlined_call_operand.hbm [shape: bf16[2,8,32], index: 0, kind: input, shape index: {}]   ;;  %s1879_s1 = inlined_call_operand.hbm [shape: bf16[2,8,32], index: 1, kind: input, shape index: {}]   ;;  %s1880_s2 = inlined_call_operand.hbm [shape: bf16[2,8,32], index: 2, kind: input, shape index: {}]   ;;  %s1881_s3 = inlined_call_operand.vmem [shape: bf16[32,32], index: 3, kind: input, shape index: {}]   ;;  %s1882_s4 = inlined_call_operand.vmem [shape: f32[1,32], index: 4, kind: input, shape index: {}]   ;;  %s1883_s5 = inlined_call_operand.hbm [shape: bf16[32,32], index: 5, kind: input, shape index: {}]   ;;  %s1884_s6 = inlined_call_operand.vmem [shape: f32[1,32], index: 6, kind: input, shape index: {}]   ;;  %s1885_s7 = inlined_call_operand.vmem [shape: bf16[32,8], index: 7, kind: input, shape index: {}]   ;;  %s1886_s8 = inlined_call_operand.vmem [shape: f32[1,8], index: 8, kind: input, shape index: {}]   ;;  %s1887_s9 = inlined_call_operand.vmem [shape: bf16[8,32], index: 9, kind: input, shape index: {}]   ;;  %s1888_s10 = inlined_call_operand.vmem [shape: f32[1,32], index: 10, kind: input, shape index: {}]   ;;  %s1889_s11 = inlined_call_operand.hbm [shape: f32[2,8,32], index: 11, kind: output, shape index: {0}]   ;;  %s1890_s12 = inlined_call_operand.hbm [shape: f32[2,8,8], index: 12, kind: output, shape index: {1}]  }
   0x1   :  { %1902 = sst [smem:[#allocation26_spill]] %s1879_s1 }
   0x2   :  { %1903 = sst [smem:[#allocation27_spill]] %s1883_s5 }
   0x3   :  { %1904 = sst [smem:[#allocation28_spill]] %s1887_s9 }
   0x4   :  { %1905 = sst [smem:[#allocation29_spill]] %s1888_s10 }
   0x5   :  { %1906 = sst [smem:[#allocation30_spill]] %s1889_s11 }
   0x6   :  { %1907 = sst [smem:[#allocation31_spill]] %s1890_s12 }
   0x7   :  { %18 = vsyncpa [#allocation3], 0 }
   0x8   :  { %20 = vsyncpa [#allocation3 + $0x1], 0 }
   0x9   :  { %21 = vsyncpa [#allocation6], 0 }
   0xa   :  { %23 = vsyncpa [#allocation6 + $0x1], 0 }
   0xb   :  { %24 = vsyncpa [#allocation9], 0 }
   0xc   :  { %25 = vsyncpa [#allocation4], 0 }
   0xd   :  { %27 = vsyncpa [#allocation4 + $0x1], 0 }
   0xe   :  { %28 = vsyncpa [#allocation12], 0 }
   0xf   :  { %30 = vsyncpa [#allocation12 + $0x1], 0  ;;  %s1613_s21 = smov 0   ;;  %s1615_s22 = smov 0  }
  0x10   :  { %s1617_s23 = smov 0   ;;  %s1619_s24 = smov 0  }
  0x11   :  { %s1621_s25 = smov 0   ;;  %s1623_s26 = smov 0  }
  0x12 LB: > { %1908 = sst [smem:[#allocation18_spill]] %s1520_s21  ;;  %s1644_s27 = sadd.s32 4294967295, %s1540_s26   ;;  %s1540_s26 = sphi %s1623_s26, %s36_s26   ;;  %s1536_s25 = sphi %s1621_s25, %s1936_s25   ;;  %s1532_s24 = sphi %s1619_s24, %s1935_s24   ;;  %s1528_s23 = sphi %s1617_s23, %s1939_s23   ;;  %s1524_s22 = sphi %s1615_s22, %s1938_s22   ;;  %s1520_s21 = sphi %s1613_s21, %s1937_s21  }
  0x13   : > { %1909 = sst [smem:[#allocation19_spill]] %s1532_s24  ;;  %s1120_s28 = sadd.s32 4294967294, %s1540_s26  }
  0x14   : > { %1910 = sst [smem:[#allocation20_spill]] %s1536_s25  ;;  %s48_s29 = sadd.s32 1, %s1536_s25 }
  0x15   : > { %1911 = sst [smem:[#allocation21_spill]] %s1540_s26  ;;  %s57_s30 = sadd.s32 1, %s1528_s23 }
  0x16   : > { %p50_p0 = scmp.ge.s32.totalorder %s48_s29, 2  ;;  %p64_p1 = scmp.ne.s32.totalorder %s1528_s23, %s1524_s22 }
  0x17   : > { %p65_p2 = scmp.eq.s32.totalorder %s1540_s26, 0  ;;  %p70_p3 = scmp.ne.s32.totalorder %s1524_s22, %s1520_s21 }
  0x18   : > { %s1941_s29 = smov (%p50_p0, %s48_s29), 0  ;;  %p316_p5 = scmp.eq.s32.totalorder %s1644_s27, 1 }
  0x19   : > { %1912 = sst [smem:[#allocation22_spill]] %s1941_s29  ;;  %p1656_p4 = por %p65_p2, %p64_p1 }
  0x1a   : > { %s52_s14 = ssub.s32 %s1536_s25, %s1941_s29  ;;  %p322_p6 = scmp.eq.s32.totalorder %s1120_s28, 1 }
  0x1b   : > { %p55_p7 = scmp.eq.s32.totalorder %s52_s14, 0  ;;  %p1663_p8 = por %p316_p5, %p64_p1 }
  0x1c   : > { %p1670_p9 = por %p322_p6, %p70_p3  ;;  %p1123_p10 = scmp.ge.s32.totalorder %s1540_s26, 2 }
  0x1d   : > { %s1914_s15 = scalar_select %p1663_p8, 1, 0 }
  0x1e   : > { %s1916_s16 = scalar_select %p1670_p9, 1, 0 }
  0x1f   : > { %1915 = sst [smem:[#allocation23_spill]] %s1914_s15  ;;  %p1221_p11 = scmp.lt.s32.totalorder %s1540_s26, 2 }
  0x20   : > { %1917 = sst [smem:[#allocation24_spill]] %s1916_s16  ;;  %s1894_s18 = sand.u32 1, %s1528_s23  }
  0x21   : > { %s1675_s17 = scalar_select %p55_p7, %s1528_s23, %s57_s30  }
  0x22   : > { %s1681_s19 = sshll.u32 %s1536_s25, 2  ;;  %s1685_s20 = sshll.u32 %s1894_s18, 2 }
  0x23   : > { %1918 = sst [smem:[#allocation25_spill]] %s1675_s17  ;;  %p1689_p12 = pnand %p1221_p11, %p1656_p4 }
  0x24   : > { %s425_s30 = sand.u32 1, %s1540_s26   ;;  %s1920_s1 = sld [smem:[#allocation26_spill]] }
  0x25   : > { %s429_s16 = scalar_lea.vmem [#allocation5], %s1685_s20  ;;  %s1699_s18 = scalar_lea.sflag [#allocation6], %s425_s30 }
  0x26   : > { %s437_s10 = sshll.u32 %s429_s16, 4  ;;  %p71_p13 = scmp.eq.s32.totalorder %s1644_s27, 0  ;;  %s438_s10 = int_to_ptr.vmem [resolvable:$true] %s437_s10 }
  0x27   : > { %p1121_p0 = scmp.ge.s32.totalorder %s1540_s26, 1  ;;  %p357_p1 = scmp.lt.s32.totalorder %s1540_s26, 3 }
  0x28   : > { %p1712_p2 = por %p71_p13, %p70_p3  ;;  %s1922_s5 = sld [smem:[#allocation27_spill]] }
  0x29   : > { %p1719_p4 = pnand %p1121_p0, %p357_p1  ;;  %s414_s16 = scalar_lea.hbm %s1878_s0, %s1681_s19 }
  0x2a   : > { %s433_s17 = scalar_lea.hbm %s1920_s1, %s1681_s19  ;;  %s416_s1 = sshll.u32 %s414_s16, 4  ;;  %s417_s1 = int_to_ptr.hbm [resolvable:$true] %s416_s1 }
  0x2b   : > { %s435_s25 = sshll.u32 %s433_s17, 4  ;;  %p1199_p5 = pneg %p1719_p4  ;;  %s436_s25 = int_to_ptr.hbm [resolvable:$true] %s435_s25 }
  0x2c   : > { %1209 = dma.hbm_to_vmem [thread:$0]  (!%p1689_p12), %s436_s25, 64, %s438_s10, %s1699_s18  }
  0x2d   : > { %s1542_s10 = smov [#allocation8]   ;;  %p1200_p3 = pnand %p1199_p5, %p71_p13 }
  0x2e   : > { %s374_s17 = sshll.u32 %s1922_s5, 4  ;;  %s376_s25 = sshll.u32 %s1542_s10, 4  ;;  %s375_s17 = int_to_ptr.hbm [resolvable:$true] %s374_s17  ;;  %s377_s25 = int_to_ptr.vmem [resolvable:$true] %s376_s25 }
  0x2f   : > { %s1543_s5 = smov 64   ;;  %s1544_s26 = smov 4  }
  0x30   : > { %1202 = dma.hbm_to_vmem [thread:$0]  (!%p1200_p3), %s375_s17, 256, %s377_s25, [#allocation9], %s1543_s5, %s1543_s5, %s1544_s26  }
  0x31   : > { %s409_s21 = scalar_lea.vmem [#allocation2], %s1685_s20  ;;  %s1924_s12 = sand.u32 1, %s1528_s23  }
  0x32   : > { %s418_s11 = sshll.u32 %s409_s21, 4  ;;  %s406_s15 = scalar_lea.sflag [#allocation3], %s1924_s12  ;;  %s419_s11 = int_to_ptr.vmem [resolvable:$true] %s418_s11 }
  0x33   : > { %1206 = dma.hbm_to_vmem [thread:$0]  (!%p1689_p12), %s417_s1, 64, %s419_s11, %s406_s15  }
  0x34   : > { %s452_s24 = scalar_lea.hbm %s1880_s2, %s1681_s19  ;;  %s448_s14 = scalar_lea.vmem [#allocation7], %s1685_s20 }
  0x35   : > { %s456_s13 = sshll.u32 %s448_s14, 4  ;;  %s454_s16 = sshll.u32 %s452_s24, 4  ;;  %s457_s13 = int_to_ptr.vmem [resolvable:$true] %s456_s13  ;;  %s455_s16 = int_to_ptr.hbm [resolvable:$true] %s454_s16 }
  0x36   : > { %1212 = dma.hbm_to_vmem [thread:$0]  (!%p1689_p12), %s455_s16, 64, %s457_s13, %s1699_s18  }
  0x37   : > { %465 = sbr.rel (%p1719_p4) target bundleno = 1389 (0x56d), region = 64  ;;  %s1747_s5 = sand.u32 (!%p1719_p4), 1, %s1524_s22  }
  0x38   : > { %s1131_s1 = sshll.u32 (!%p1719_p4), %s1747_s5, 2  ;;  %s468_s11 = scalar_lea.sflag (!%p1719_p4), [#allocation3], %s1747_s5 }
  0x39   : > { %s471_s9 = scalar_lea.vmem (!%p1719_p4), [#allocation2], %s1131_s1 }
  0x3c   : > { %1499 = dma.done.wait (%p1712_p2), %s468_s11, 64  }
  0x3d   : > { %1501 = vsyncadd (%p1712_p2), %s468_s11, 4294967232  ;;  %s477_s12 = sand.u32 1, %s1644_s27   ;;  %s481_s24 = scalar_lea.vmem [#allocation5], %s1131_s1 }
  0x3e   : > { %s478_s21 = scalar_lea.sflag [#allocation6], %s477_s12 }
  0x3f   : > { %1503 = dma.done.wait (%p1712_p2), %s478_s21, 128  }
  0x40   : > { %1505 = vsyncadd (%p1712_p2), %s478_s21, 4294967168  ;;  %s491_s26 = scalar_lea.vmem [#allocation7], %s1131_s1 }
  0x41   : > { %1507 = dma.done.wait (%p71_p13), [#allocation9], 256  }
  0x42   : > { %1509 = vsyncadd (%p71_p13), [#allocation9], 4294967040  ;;  %v1182_v0 = vld [vmem:[#allocation8 + $0x8] sm:$0xff]  ;;  %v1180_v1 = vld [vmem:[%s1881_s3 + $0x8] sm:$0xff]  ;;  %vm577_vm0 = vcmask 261120   ;;  %vm669_vm1 = vcmask 64512  }
  0x43   : > { %623 = vmatpush.bf16.msra.mxu1 %v1182_v0  ;;  %v1181_v2 = vld [vmem:[#allocation8] sm:$0xff]  ;;  %v1184_v3 = vld [vmem:[%s1885_s7 + $0x8] sm:$0xff]  ;;  %587 = vmatpush.bf16.msra.mxu0 %v1180_v1  ;;  %v1179_v4 = vld [vmem:[%s1881_s3] sm:$0xff]  ;;  %s1545_s13 = smov 112   ;;  %s1546_s16 = smov 120   ;;  %vm747_vm2 = vcmask 1043456  }
  0x44   : > { %659 = vmatpush.bf16.msra.mxu2 %v1184_v3  ;;  %v1183_v5 = vld [vmem:[%s1885_s7] sm:$0xff]  ;;  %v555_v6 = vld [vmem:[%s481_s24] sm:$0xf]  ;;  %v556_v8 = vld [vmem:[%s491_s26] sm:$0xf]  ;;  %s1547_s1 = smov 104  }
  0x45   : > { %v554_v7 = vld [vmem:[%s471_s9] sm:$0xf]  ;;  %s1135_s12 = sshll.u32 %s1747_s5, 3  ;;  %s1925_s21 = sld [smem:[#allocation19_spill]] }
  0x46   : > { %v1278_v9 = vld [vmem:[%s1884_s6] ss:$0 sm:$0xff]  ;;  %s552_s24 = scalar_lea.vmem [#allocation11], %s1135_s12  ;;  %s1926_s18 = sld [smem:[#allocation28_spill]] }
  0x47   : > { %624 = vmatpush.bf16.msra.mxu1 %v1181_v2  ;;  %588 = vmatpush.bf16.msra.mxu0 %v1179_v4  ;;  %v1279_v10 = vld [vmem:[%s1882_s4] ss:$0 sm:$0xff]  ;;  %s1928_s17 = sld [smem:[#allocation31_spill]]  ;;  %s949_s30 = sshll.u32 %s552_s24, 4  ;;  %s950_s30 = int_to_ptr.vmem [resolvable:$true] %s949_s30 }
  0x48   : > { %660 = vmatpush.bf16.msra.mxu2 %v1183_v5  ;;  %v1280_v24 = vld [vmem:[%s1886_s8] ss:$0 sm:$0xff]  ;;  %s921_s10 = scalar_lea.sflag [#allocation12], %s1747_s5 }
  0x4a   : > { %1154 = vmatmul.msk.bf16.vlgmr.msra.gmra.mxu1 %vm577_vm0, %v555_v6  ;;  %1145 = vmatmul.msk.bf16.vlgmr.msra.gmra.mxu0 %vm577_vm0, %v554_v7 }
  0x4b   : > { %1163 = vmatmul.msk.bf16.vlgmr.msra.gmra.mxu2 %vm577_vm0, %v556_v8  ;;  %s1175_s20 = sshll.u32 %s1925_s21, 3 }
  0x4d   : > { %s947_s27 = scalar_lea.hbm %s1928_s17, %s1175_s20  ;;  %s1438_s11 = scalar_lea.hbm %s1928_s17, 16 }
  0x4e   : > { %s951_s25 = sshll.u32 %s947_s27, 4  ;;  %s952_s25 = int_to_ptr.hbm [resolvable:$true] %s951_s25 }
  0x4f   : > { %s1432_s14 = sshra.s32 %s952_s25, 4  ;;  %s1433_s14 = int_to_ptr.hbm [resolvable:$true] %s1432_s14 }
  0x50   : > { %p1439_p12 = scmp.lt.s32.totalorder %s1433_s14, %s1928_s17 }
  0xc7   : > { %v626_v11 = vpop.f32.mrf.mxu1  ;;  %v590_v13 = vpop.f32.mrf.mxu0 }
  0xc8   : > { %v627_v12 = vadd.f32 %v1278_v9, %v626_v11  ;;  %v591_v14 = vadd.f32 %v1279_v10, %v590_v13 }
  0xca   : > { %v668_v15 = vpack.c.bf16 %v627_v12, %v627_v12  ;;  %v667_v18 = vpack.c.bf16 %v591_v14, %v591_v14 }
  0xcc   : > { %v708_v16 = vunpack.c.l.b16 %v668_v15  ;;  %v674_v17 = vsel %vm669_vm1, %v668_v15, 0  ;;  %v703_v21 = vunpack.c.l.b16 %v667_v18 }
  0xcd   : > { %683 = vmatpush.bf16.xpose.msra.mxu3 %v674_v17 }
  0xce   : > { %v709_v19 = vpack.c.b16 %v708_v16, %v708_v16  ;;  %v704_v23 = vpack.c.b16 %v703_v21, %v703_v21  ;;  %v662_v25 = vpop.f32.mrf.mxu2 }
  0xcf   : > { %v628_v20 = vpop.f32.mrf.mxu1  ;;  %v592_v22 = vpop.f32.mrf.mxu0  ;;  %v663_v26 = vadd.f32 %v1280_v24, %v662_v25 }
  0xd0   : > { %782 = vrot.lane.b32.xlu2 %v709_v19, %s1545_s13  ;;  %710 = vrot.lane.b32.xlu0 %v709_v19, %s1546_s16 }
  0xd1   : > { %v666_v27 = vpack.c.bf16 %v663_v26, %v663_v26 }
  0xd3   : > { %v749_v28 = vsel %vm747_vm2, %v666_v27, 0 }
  0xd4   : > { %1164 = vmatmul.msk.bf16.vlgmr.msra.gmra.mxu3 %vm669_vm1, %v667_v18  ;;  %758 = vmatpush.bf16.msrb.mxu1 %v749_v28 }
  0xd5   : > { %774 = vmatpush.bf16.msrb.mxu2 %v749_v28 }
  0xd6   : > { %v664_v29 = vpop.f32.mrf.mxu2 }
  0xd8   : > { %835 = vrot.lane.b32.xlu2 %v709_v19, %s1547_s1  ;;  %705 = vrot.lane.b32.xlu0 %v704_v23, %s1546_s16 }
  0xd9   : > { %879 = vmatpush.bf16.msra.mxu2 %v749_v28 }
  0xe0   : > { %780 = vrot.lane.b32.xlu0 %v704_v23, %s1545_s13  ;;  %s1434_s13 = scalar_lea.hbm %s1433_s14, 8 }
  0xe1   : > { %p1435_p6 = scmp.ne.s32.totalorder %s1433_s14, %s1434_s13  ;;  %p1440_p13 = scmp.lt.s32.totalorder %s1438_s11, %s1434_s13 }
  0xe3   : > { %p1436_p7 = pnand %p1435_p6, %p1663_p8  ;;  %p1441_p0 = por %p1440_p13, %p1439_p12 }
  0xe5   : > { %p1437_p11 = pneg %p1436_p7 }
  0xe7   : > { %p1442_p1 = pnand %p1441_p0, %p1437_p11 }
 0x12a   : > { %v783_v30 = vpop.permute.xlu2 %782 }
 0x12b   : > { %v788_v31 = vsel %vm669_vm1, %v783_v30, 0 }
 0x12c   : > { %797 = vmatpush.bf16.xpose.msrb.mxu3 %v788_v31 }
 0x132   : > { %v836_v32 = vpop.permute.xlu2 %835 }
 0x133   : > { %v841_v33 = vsel %vm669_vm1, %v836_v32, 0 }
 0x134   : > { %850 = vmatpush.bf16.xpose.msra.mxu1 %v841_v33 }
 0x142   : > { %v711_v34 = vpop.permute.xlu0 %710 }
 0x143   : > { %v716_v35 = vsel %vm669_vm1, %v711_v34, 0 }
 0x144   : > { %725 = vmatpush.bf16.xpose.msrb.mxu0 %v716_v35  ;;  %v888_v35 = vld [vmem:[%s1926_s18] sm:$0xf] }
 0x14a   : > { %v706_v36 = vpop.permute.xlu0 %705 }
 0x14b   : > { %1165 = vmatmul.msk.bf16.vlgmr.msrb.gmra.mxu0 %vm669_vm1, %v706_v36  ;;  %v897_v36 = vsel %vm747_vm2, %v888_v35, 0 }
 0x14c   : > { %826 = vmatpush.bf16.msra.mxu0 %v749_v28  ;;  %906 = vmatpush.bf16.msra.mxu3 %v897_v36 }
 0x152   : > { %v781_v37 = vpop.permute.xlu0 %780 }
 0x153   : > { %1168 = vmatmul.msk.bf16.vlgmr.msrb.gmra.mxu3 %vm669_vm1, %v781_v37 }
 0x157   : > { %v685_v38 = vpop.f32.mrf.mxu3 }
 0x158   : > { %v689_v39 = vsel %vm669_vm1, %v685_v38, -inf }
 0x159   : > { %690 = vmax.xlane.f32.xlu2 %v689_v39 }
 0x15f   : > { %v687_v40 = vpop.f32.mrf.mxu3 }
 0x1c8   : > { %v727_v41 = vpop.f32.mrf.mxu0 }
 0x1c9   : > { %v731_v42 = vsel %vm669_vm1, %v727_v41, -inf }
 0x1ca   : > { %732 = vmax.xlane.f32.xlu1 %v731_v42 }
 0x1cc   : > { %v691_v43 = vpop.xlane.xlu2 %690 }
 0x1cd   : > { %v692_v44 = vsub.f32 %v685_v38, %v691_v43 }
 0x1cf   : > { %v693_v45 = vmul.f32 1.442695, %v692_v44 }
 0x1d0   : > { %v729_v46 = vpop.f32.mrf.mxu0 }
 0x1d1   : > { %1282 = vpow2.f32 %v693_v45 }
 0x1d6   : > { %v799_v47 = vpop.f32.mrf.mxu3 }
 0x1d7   : > { %v1283_v48 = vpop.eup %1282  ;;  %v803_v60 = vsel %vm669_vm1, %v799_v47, -inf }
 0x1d8   : > { %v695_v49 = vsel %vm669_vm1, %v1283_v48, 0.0 }
 0x1d9   : > { %696 = vadd.xlane.f32.xlu2 %v695_v49 }
 0x1de   : > { %v801_v50 = vpop.f32.mrf.mxu3 }
 0x23d   : > { %v733_v51 = vpop.xlane.xlu1 %732 }
 0x23e   : > { %v734_v52 = vsub.f32 %v727_v41, %v733_v51 }
 0x240   : > { %v735_v53 = vmul.f32 1.442695, %v734_v52 }
 0x242   : > { %1284 = vpow2.f32 %v735_v53 }
 0x248   : > { %v1285_v54 = vpop.eup %1284 }
 0x249   : > { %v737_v55 = vsel %vm669_vm1, %v1285_v54, 0.0 }
 0x24a   : > { %738 = vadd.xlane.f32.xlu1 %v737_v55 }
 0x24c   : > { %v697_v56 = vpop.xlane.xlu2 %696 }
 0x24d   : > { %1286 = vrcp.f32 %v697_v56 }
 0x253   : > { %v1287_v57 = vpop.eup %1286 }
 0x254   : > { %v699_v58 = vmul.f32 %v1287_v57, %v1283_v48 }
 0x256   : > { %v701_v59 = vpack.c.bf16 %v699_v58, %v699_v58 }
 0x258   : > { %1167 = vmatmul.msk.bf16.vlgmr.msrb.gmra.mxu2 %vm669_vm1, %v701_v59 }
 0x263   : > { %833 = vrot.lane.b32.xlu1 %v704_v23, %s1547_s1 }
 0x28d   : > { %804 = vmax.xlane.f32.xlu1 %v803_v60 }
 0x2bd   : > { %v739_v61 = vpop.xlane.xlu1 %738 }
 0x2be   : > { %1288 = vrcp.f32 %v739_v61 }
 0x2c4   : > { %v1289_v62 = vpop.eup %1288 }
 0x2c5   : > { %v741_v63 = vmul.f32 %v1289_v62, %v1285_v54 }
 0x2c7   : > { %v743_v0 = vpack.c.bf16 %v741_v63, %v741_v63  ;;  %v742_v21 = vadd.f32 %v741_v63, %v699_v58 }
 0x2c9   : > { %1166 = vmatmul.msk.bf16.vlgmr.msrb.gmra.mxu1 %vm669_vm1, %v743_v0 }
 0x2d5   : > { %v834_v1 = vpop.permute.xlu1 %833 }
 0x2d9   : > { %1170 = vmatmul.msk.bf16.vlgmr.msra.gmra.mxu1 %vm669_vm1, %v834_v1 }
 0x2db   : > { %v776_v2 = vpop.f32.mrf.mxu2 }
 0x2e3   : > { %v778_v3 = vpop.f32.mrf.mxu2 }
 0x300   : > { %v805_v5 = vpop.xlane.xlu1 %804 }
 0x301   : > { %v806_v6 = vsub.f32 %v799_v47, %v805_v5 }
 0x303   : > { %v807_v8 = vmul.f32 1.442695, %v806_v6 }
 0x305   : > { %1290 = vpow2.f32 %v807_v8 }
 0x30b   : > { %v1291_v11 = vpop.eup %1290 }
 0x30c   : > { %v809_v13 = vsel %vm669_vm1, %v1291_v11, 0.0 }
 0x346   : > { %v760_v4 = vpop.f32.mrf.mxu1 }
 0x347   : > { %v777_v31 = vadd.f32 %v776_v2, %v760_v4 }
 0x34e   : > { %v762_v7 = vpop.f32.mrf.mxu1 }
 0x356   : > { %v852_v9 = vpop.f32.mrf.mxu1 }
 0x357   : > { %v856_v10 = vsel %vm669_vm1, %v852_v9, -inf }
 0x358   : > { %857 = vmax.xlane.f32.xlu0 %v856_v10 }
 0x35e   : > { %v854_v12 = vpop.f32.mrf.mxu1 }
 0x360   : > { %810 = vadd.xlane.f32.xlu0 %v809_v13 }
 0x3cb   : > { %v858_v14 = vpop.xlane.xlu0 %857 }
 0x3cc   : > { %v859_v15 = vsub.f32 %v852_v9, %v858_v14 }
 0x3ce   : > { %v860_v16 = vmul.f32 1.442695, %v859_v15 }
 0x3d0   : > { %1292 = vpow2.f32 %v860_v16 }
 0x3d3   : > { %v811_v17 = vpop.xlane.xlu0 %810 }
 0x3d4   : > { %1294 = vrcp.f32 %v811_v17 }
 0x3d6   : > { %v1293_v18 = vpop.eup %1292 }
 0x3d7   : > { %v862_v19 = vsel %vm669_vm1, %v1293_v18, 0.0 }
 0x3d8   : > { %863 = vadd.xlane.f32.xlu2 %v862_v19 }
 0x3da   : > { %v1295_v20 = vpop.eup %1294 }
 0x3db   : > { %v813_v22 = vmul.f32 %v1295_v20, %v1291_v11 }
 0x3dd   : > { %v814_v23 = vadd.f32 %v813_v22, %v742_v21  ;;  %v815_v24 = vpack.c.bf16 %v813_v22, %v813_v22 }
 0x3df   : > { %1169 = vmatmul.msk.bf16.vlgmr.msra.gmra.mxu0 %vm669_vm1, %v815_v24 }
 0x44b   : > { %v864_v25 = vpop.xlane.xlu2 %863 }
 0x44c   : > { %1296 = vrcp.f32 %v864_v25 }
 0x452   : > { %v1297_v26 = vpop.eup %1296 }
 0x453   : > { %v866_v27 = vmul.f32 %v1297_v26, %v1293_v18 }
 0x455   : > { %v867_v28 = vadd.f32 %v866_v27, %v814_v23  ;;  %v868_v29 = vpack.c.bf16 %v866_v27, %v866_v27 }
 0x457   : > { %v913_v30 = vmul.f32 0.25, %v867_v28  ;;  %1171 = vmatmul.msk.bf16.vlgmr.msra.gmra.mxu2 %vm669_vm1, %v868_v29 }
 0x459   : > { %914 = vst.msk [vmem:[%s552_s24] sm:$0xff] %vm669_vm1, %v913_v30 }
 0x45c   : > { %v828_v32 = vpop.f32.mrf.mxu0 }
 0x45d   : > { %v832_v33 = vadd.f32 %v828_v32, %v777_v31 }
 0x464   : > { %v830_v34 = vpop.f32.mrf.mxu0 }
 0x4da   : > { %v881_v37 = vpop.f32.mrf.mxu2 }
 0x4db   : > { %v885_v38 = vadd.f32 %v881_v37, %v832_v33 }
 0x4dd   : > { %v886_v39 = vmul.f32 0.25, %v885_v38 }
 0x4df   : > { %v887_v40 = vpack.c.bf16 %v886_v39, %v886_v39 }
 0x4e1   : > { %1172 = vmatmul.msk.bf16.vlgmr.msra.gmra.mxu3 %vm669_vm1, %v887_v40 }
 0x4e2   : > { %v883_v41 = vpop.f32.mrf.mxu2 }
 0x4e3   : > { %1445 = shalt.err (!%p1442_p1)
}
 0x4e4   : > { %1196 = dma.vmem_to_hbm [thread:$0]  (%p1663_p8), %s950_s30, 128, %s952_s25, %s921_s10  }
 0x4e5   : > { %s1929_s15 = sld [smem:[#allocation30_spill]]  ;;  %s545_s14 = scalar_lea.vmem [#allocation10], %s1135_s12 }
 0x4e6   : > { %s1930_s27 = sld [smem:[#allocation29_spill]]  ;;  %s934_s13 = sshll.u32 %s545_s14, 4  ;;  %s935_s13 = int_to_ptr.vmem [resolvable:$true] %s934_s13 }
 0x4e7   : > { %s916_s30 = scalar_lea.sflag [#allocation4], %s1747_s5 }
 0x4eb   : > { %s932_s18 = scalar_lea.hbm %s1929_s15, %s1175_s20  ;;  %s1466_s12 = scalar_lea.hbm %s1929_s15, 16 }
 0x4ec   : > { %v1281_v42 = vld [vmem:[%s1930_s27] ss:$0 sm:$0xff]  ;;  %s936_s16 = sshll.u32 %s932_s18, 4  ;;  %s937_s16 = int_to_ptr.hbm [resolvable:$true] %s936_s16 }
 0x4ed   : > { %s1460_s25 = sshra.s32 %s937_s16, 4  ;;  %s1461_s25 = int_to_ptr.hbm [resolvable:$true] %s1460_s25 }
 0x4ee   : > { %s1462_s10 = scalar_lea.hbm %s1461_s25, 8  ;;  %p1467_p3 = scmp.lt.s32.totalorder %s1461_s25, %s1929_s15 }
 0x4ef   : > { %p1463_p2 = scmp.ne.s32.totalorder %s1461_s25, %s1462_s10  ;;  %p1468_p6 = scmp.lt.s32.totalorder %s1466_s12, %s1462_s10 }
 0x4f1   : > { %p1464_p4 = pnand %p1463_p2, %p1663_p8  ;;  %p1469_p7 = por %p1468_p6, %p1467_p3 }
 0x4f3   : > { %p1465_p5 = pneg %p1464_p4 }
 0x4f5   : > { %p1470_p11 = pnand %p1469_p7, %p1465_p5 }
 0x564   : > { %v908_v43 = vpop.f32.mrf.mxu3 }
 0x565   : > { %v909_v44 = vadd.f32 %v1281_v42, %v908_v43 }
 0x567   : > { %912 = vst.msk [vmem:[%s545_s14] sm:$0xff] %vm577_vm0, %v909_v44 }
 0x568   : > { %1473 = shalt.err (!%p1470_p11)
}
 0x569   : > { %1195 = dma.vmem_to_hbm [thread:$0]  (%p1663_p8), %s935_s13, 128, %s937_s16, %s916_s30  }
 0x56c   : > { %v910_v45 = vpop.f32.mrf.mxu3 }
 0x56d PF: > { %s1931_s5 = sld [smem:[#allocation18_spill]]  ;;  %p1214_p12 = pnand %p1123_p10, %p1670_p9 }
 0x56e   : > { %s1933_s24 = sld [smem:[#allocation21_spill]] }
 0x56f   : > { %p1215_p13 = pneg %p1214_p12 }
 0x573   : > { %s963_s26 = sand.u32 1, %s1931_s5  }
 0x574   : > { %s964_s18 = scalar_lea.sflag [#allocation4], %s963_s26 }
 0x575   : > { %1511 = dma.done.wait (%p1215_p13), %s964_s18, 128  }
 0x576   : > { %1513 = vsyncadd (%p1215_p13), %s964_s18, 4294967168  ;;  %s974_s28 = scalar_lea.sflag [#allocation12], %s963_s26 }
 0x577   : > { %1515 = dma.done.wait (%p1215_p13), %s974_s28, 128  }
 0x578   : > { %1517 = vsyncadd (%p1215_p13), %s974_s28, 4294967168  ;;  %s36_s26 = sadd.s32 1, %s1933_s24   ;;  %s1934_s19 = sld [smem:[#allocation25_spill]] }
 0x579   : > { %p33_p0 = scmp.ge.s32.totalorder %s36_s26, 4   ;;  %s1935_s24 = sld [smem:[#allocation20_spill]] }
 0x57a   : > { %s1936_s25 = sld [smem:[#allocation22_spill]]  ;;  %s1937_s21 = smov %s1524_s22 }
 0x57b   : > { %s1938_s22 = smov %s1528_s23  ;;  %35 = sbr.rel (!%p33_p0) target bundleno = 18 (0x12), region = 154 }
 0x57e   : > { %s1939_s23 = smov %s1934_s19 }
 0x580   :  { %980 = vsyncpa [#allocation3], 1 }
 0x581   :  { %982 = vsyncpa [#allocation3 + $0x1], 1 }
 0x582   :  { %983 = vsyncpa [#allocation6], 1 }
 0x583   :  { %985 = vsyncpa [#allocation6 + $0x1], 1 }
 0x584   :  { %986 = vsyncpa [#allocation9], 1 }
 0x585   :  { %987 = vsyncpa [#allocation4], 1 }
 0x586   :  { %989 = vsyncpa [#allocation4 + $0x1], 1 }
 0x587   :  { %990 = vsyncpa [#allocation12], 1 }
 0x588   :  { %992 = vsyncpa [#allocation12 + $0x1], 1 }

</bundles_post_ra>
